<compile_context>
chip_gen: v6e
topology: v6e:2x2x1
jax: 0.10.0
libtpu: 0.0.40
codegen_flags: <defaults>
</compile_context>

<pallas_src>
import numpy as np
import jax
import jax.numpy as jnp
from jax.experimental import pallas as pl
from jax.experimental.pallas import tpu as pltpu


def _round_up(n, m):
    return ((n + m - 1) // m) * m


def _largest_divisor_leq(n, k):
    k = max(1, min(int(k), int(n)))
    for d in range(k, 0, -1):
        if n % d == 0:
            return d
    return 1


def _vmem_capacity_bytes():
    try:
        info = pltpu.get_tpu_info()
        cap = getattr(info, "vmem_capacity_bytes", None)
        if cap:
            return int(cap)
    except Exception:
        pass
    return 64 * 1024 * 1024  # conservative: v7x per-core VMEM


def _ffn_mean_kernel(x_ref, inv_ref, npad_ref, w1_ref, b1_ref, w2_ref, b2_ref,
                     out_ref, hsum_ref):
    """Grid = (batch blocks ["parallel"], time blocks ["arbitrary" reduction]).

    Hot loop: hsum[b_tile, H_pad] += sum over the time tile of relu(x @ W1 + b1).
    Finalize (last time step): subtract the relu(b1) contribution of the zeroed
    (masked / padded) rows, scale by 1/valid_count, apply fc2, store lane-dense.
    """
    t = pl.program_id(1)

    @pl.when(t == 0)
    def _init():
        hsum_ref[...] = jnp.zeros_like(hsum_ref)

    tt, bt, c = x_ref.shape
    h_pad = hsum_ref.shape[1]
    # bt is a multiple of 8 (sublanes), so this merge of the leading dims is
    # layout-preserving; cast to the matmul dtype in-kernel (no wrapper copy
    # needed when x is streamed directly).
    xb = x_ref[...].astype(w1_ref.dtype).reshape(tt * bt, c)
    h = jnp.dot(xb, w1_ref[...], preferred_element_type=jnp.float32)
    h = jnp.maximum(h + b1_ref[...], 0.0)                 # (tt*bt, H_pad) f32
    # No per-row mask multiply in the hot loop: masked rows were zeroed in x
    # and are corrected exactly at finalize.  Axis-0 sum is plain VPU adds.
    hsum_ref[...] += h.reshape(tt, bt, h_pad).sum(axis=0)

    @pl.when(t == pl.num_programs(1) - 1)
    def _finalize():
        relu_b1 = jnp.maximum(b1_ref[...], 0.0)           # (1, H_pad), exact
        # Every zeroed row contributed exactly relu(b1); remove those, then
        # divide by the valid-frame count (masked mean of the fc1 output).
        hmean = (hsum_ref[...] - npad_ref[...] * relu_b1) * inv_ref[...]
        y = jnp.dot(hmean.astype(w2_ref.dtype), w2_ref[...],
                    preferred_element_type=jnp.float32) + b2_ref[...]
        out_ref[...] = y.astype(out_ref.dtype)


def ffn_decoder_classifier(x, padding_mask, w1, b1, w2, b2, *,
                           time_tile=None, target_rows=512,
                           x_buffer_count=None, compute_dtype=jnp.bfloat16):
    """x: (T, B, C); padding_mask: (B, T) bool (True == pad) or None.
    Weights stored (in, out): w1 (C, 2C), w2 (2C, O).  Returns (B, O)."""
    T, B, C = x.shape
    H = w1.shape[1]
    O = w2.shape[1]
    out_dtype = x.dtype
    out_isize = jnp.dtype(out_dtype).itemsize
    cbytes = jnp.dtype(compute_dtype).itemsize

    # ---- batch / feature padding and batch-parallel split -------------------
    B_pad = _round_up(B, 8)                 # sublane alignment
    if B_pad >= 16 and B_pad % 16 == 0:
        n_b, b_tile = 2, B_pad // 2         # feeds v7x's second TensorCore
    else:
        n_b, b_tile = 1, B_pad
    H_pad = _round_up(H, 128)               # lane-dense fc1 output / scratch
    O_pad = _round_up(O, 128)               # lane-dense final store

    # ---- VMEM-aware time-tile derivation ------------------------------------
    cap = _vmem_capacity_bytes()
    budget = int(cap * 0.7)
    w_bytes = C * H_pad * cbytes + H_pad * 4 + H_pad * O_pad * cbytes + O_pad * 4
    fixed = (2 * w_bytes                        # weights (assume double-buffered)
             + 2 * 2 * b_tile * 4               # inv + npad operands
             + 2 * b_tile * O_pad * out_isize   # out, double-buffered
             + b_tile * H_pad * 4               # hsum scratch
             + 2 * 1024 * 1024)                 # misc compiler scratch
    x_cap_bytes = max(cbytes, jnp.dtype(x.dtype).itemsize)
    per_t = b_tile * (2 * C * x_cap_bytes + H_pad * 4)   # x (2 bufs) + f32 h slab
    tt_cap = max(1, (budget - fixed) // per_t)

    desired = time_tile if time_tile is not None else max(1, target_rows // b_tile)
    desired = int(max(1, min(desired, tt_cap, T)))

    # ---- path choice: stream x directly vs. padded/masked compute-dtype copy
    need_copy = (padding_mask is not None) or (B_pad != B)
    if not need_copy:
        if time_tile is not None:
            tt = desired
            need_copy = (T % tt != 0)
        else:
            tt = _largest_divisor_leq(T, desired)
            if tt < max(1, desired // 4):
                need_copy = True               # pathological divisor; pad time
    if need_copy:
        tt = desired
        T_pad = _round_up(T, tt)
    else:
        T_pad = T
    n_t = T_pad // tt

    # ---- operand prep --------------------------------------------------------
    w1p = jnp.zeros((C, H_pad), compute_dtype).at[:, :H].set(w1.astype(compute_dtype))
    b1p = jnp.zeros((1, H_pad), jnp.float32).at[0, :H].set(b1.astype(jnp.float32))
    w2p = jnp.zeros((H_pad, O_pad), compute_dtype).at[:H, :O].set(w2.astype(compute_dtype))
    b2p = jnp.zeros((1, O_pad), jnp.float32).at[0, :O].set(b2.astype(jnp.float32))

    if need_copy:
        if padding_mask is not None:
            valid = jnp.logical_not(padding_mask).T.astype(x.dtype)     # (T, B)
            x_in = x * valid[:, :, None]                                # zero masked rows
            counts = valid.astype(jnp.float32).sum(axis=0)              # (B,)
        else:
            x_in = x
            counts = jnp.full((B,), float(T), jnp.float32)
        x_op = jnp.zeros((T_pad, B_pad, C), compute_dtype)
        x_op = x_op.at[:T, :B, :].set(x_in.astype(compute_dtype))
        # 1/valid-count (an all-padding sequence yields inf -> NaN output,
        # matching torch masked_mean's 0/0) and zero-row counts per batch entry.
        inv = jnp.ones((B_pad, 1), jnp.float32).at[:B, 0].set(1.0 / counts)
        npad = jnp.full((B_pad, 1), float(T_pad), jnp.float32).at[:B, 0].set(
            float(T_pad) - counts)
        x_bytes = cbytes
    else:
        x_op = x                       # streamed in native dtype, cast in kernel
        inv = jnp.full((B_pad, 1), 1.0 / T, jnp.float32)
        npad = jnp.zeros((B_pad, 1), jnp.float32)
        x_bytes = jnp.dtype(x.dtype).itemsize

    needed = (2 * w_bytes + 2 * 2 * b_tile * 4
              + 2 * b_tile * O_pad * out_isize
              + b_tile * H_pad * 4
              + tt * b_tile * (2 * C * x_bytes + H_pad * 4))
    vmem_limit = int(min(needed + 8 * 1024 * 1024, cap))

    cost = pl.CostEstimate(
        flops=2 * T_pad * B_pad * C * H_pad + 2 * B_pad * H_pad * O_pad,
        transcendentals=0,
        bytes_accessed=int(x_op.size * x_bytes
                           + w1p.size * cbytes + w2p.size * cbytes
                           + b1p.size * 4 + b2p.size * 4
                           + B_pad * O_pad * out_isize),
    )

    operands = (x_op, inv, npad, w1p, b1p, w2p, b2p)

    def run(single_buffer_weights):
        wmode = {"pipeline_mode": pl.Buffered(1)} if single_buffer_weights else {}
        xmode = ({} if x_buffer_count is None
                 else {"pipeline_mode": pl.Buffered(int(x_buffer_count))})
        in_specs = [
            pl.BlockSpec((tt, b_tile, C), lambda b, t: (t, b, 0), **xmode),
            pl.BlockSpec((b_tile, 1), lambda b, t: (b, 0)),
            pl.BlockSpec((b_tile, 1), lambda b, t: (b, 0)),
            pl.BlockSpec((C, H_pad), lambda b, t: (0, 0), **wmode),
            pl.BlockSpec((1, H_pad), lambda b, t: (0, 0), **wmode),
            pl.BlockSpec((H_pad, O_pad), lambda b, t: (0, 0), **wmode),
            pl.BlockSpec((1, O_pad), lambda b, t: (0, 0), **wmode),
        ]
        return pl.pallas_call(
            _ffn_mean_kernel,
            out_shape=jax.ShapeDtypeStruct((B_pad, O_pad), out_dtype),
            grid_spec=pltpu.PrefetchScalarGridSpec(
                num_scalar_prefetch=0,
                grid=(n_b, n_t),
                in_specs=in_specs,
                out_specs=pl.BlockSpec((b_tile, O_pad), lambda b, t: (b, 0)),
                scratch_shapes=[pltpu.VMEM((b_tile, H_pad), jnp.float32)],
            ),
            compiler_params=pltpu.CompilerParams(
                dimension_semantics=("parallel", "arbitrary"),
                vmem_limit_bytes=vmem_limit,
            ),
            cost_estimate=cost,
        )(*operands)

    # TODO(synk): for vocab-sized O on v7x, keep w2/b2 in HBM (pl.ANY) and
    #             async-copy them into scratch shortly before the final step.
    # TODO(synk): add an H-tile grid axis when C*H_pad weights or the
    #             (rows x H_pad) f32 intermediate exceed ~1/3 of the VMEM budget.
    try:
        out_p = run(single_buffer_weights=True)
    except Exception:
        # pl.Buffered(1) not accepted by this jax version; use default buffering.
        out_p = run(single_buffer_weights=False)

    return out_p[:B, :O]


def ref_forward(x, padding_mask, w1, b1, w2, b2):
    """Pure-JAX f32 reference matching the PyTorch forward."""
    h = jnp.maximum(x @ w1 + b1, 0.0)
    y = h @ w2 + b2
    if padding_mask is None:
        return jnp.mean(y, axis=0)
    m = jnp.logical_not(padding_mask).T.astype(jnp.float32)[:, :, None]
    return jnp.sum(y * m, axis=0) / jnp.sum(m, axis=0)


if __name__ == "__main__":
    # Small shapes consistent with the module: seq T=8, batch B=2,
    # encoder_embed_dim C=32, hidden 2C=64, output_size O=8.
    T, B, C, O = 8, 2, 32, 8
    H = 2 * C

    key = jax.random.PRNGKey(0)
    kx, k1, k2, k3, k4, kx2, kx3 = jax.random.split(key, 7)

    x = jax.random.normal(kx, (T, B, C), dtype=jnp.float32)
    w1 = jax.random.normal(k1, (C, H), dtype=jnp.float32) * (1.0 / np.sqrt(C))
    b1 = jax.random.normal(k2, (H,), dtype=jnp.float32) * 0.01
    w2 = jax.random.normal(k3, (H, O), dtype=jnp.float32) * (1.0 / np.sqrt(H))
    b2 = jax.random.normal(k4, (O,), dtype=jnp.float32) * 0.01

    # Padding mask: batch 0 has 8 valid frames, batch 1 has 5 (True == pad).
    lengths = jnp.array([8, 5])
    padding_mask = jnp.arange(T)[None, :] >= lengths[:, None]            # (B, T)

    tol = dict(rtol=3e-2, atol=3e-2)   # bf16 matmul inputs, f32 accumulation

    # 1) masked, multi-step time reduction (copy path, zeroed rows + relu(b1) fix)
    out = ffn_decoder_classifier(x, padding_mask, w1, b1, w2, b2, time_tile=2)
    jax.block_until_ready(out)
    assert out.shape == (B, O)
    np.testing.assert_allclose(
        np.asarray(out), np.asarray(ref_forward(x, padding_mask, w1, b1, w2, b2)), **tol)

    # 2) masked, auto-selected tile (single reduction step at this tiny T)
    out = ffn_decoder_classifier(x, padding_mask, w1, b1, w2, b2)
    jax.block_until_ready(out)
    np.testing.assert_allclose(
        np.asarray(out), np.asarray(ref_forward(x, padding_mask, w1, b1, w2, b2)), **tol)

    # 3) no mask, ragged time tile + unaligned batch -> padded copy, plain mean
    out = ffn_decoder_classifier(x, None, w1, b1, w2, b2, time_tile=3)
    jax.block_until_ready(out)
    np.testing.assert_allclose(
        np.asarray(out), np.asarray(ref_forward(x, None, w1, b1, w2, b2)), **tol)

    # 4) no mask, sublane-aligned batch -> x streamed directly (no wrapper copy)
    x8 = jax.random.normal(kx2, (T, 8, C), dtype=jnp.float32)
    out = ffn_decoder_classifier(x8, None, w1, b1, w2, b2)
    jax.block_until_ready(out)
    np.testing.assert_allclose(
        np.asarray(out), np.asarray(ref_forward(x8, None, w1, b1, w2, b2)), **tol)

    # 5) batch-parallel grid axis (B_pad % 16 == 0) + mask + multi-step reduction
    x16 = jax.random.normal(kx3, (T, 16, C), dtype=jnp.float32)
    lengths16 = jnp.arange(16) % T + 1
    pm16 = jnp.arange(T)[None, :] >= lengths16[:, None]
    out = ffn_decoder_classifier(x16, pm16, w1, b1, w2, b2, time_tile=4)
    jax.block_until_ready(out)
    np.testing.assert_allclose(
        np.asarray(out), np.asarray(ref_forward(x16, pm16, w1, b1, w2, b2)), **tol)

    print("KERNEL_OK")
</pallas_src>

<mosaic_0001>
module attributes {stable_mosaic.version = 11 : i64} {
  func.func @_ffn_mean_kernel(%arg0: i32, %arg1: i32, %arg2: memref<2x8x32xbf16, #tpu.memory_space<vmem>>, %arg3: memref<8x1xf32, #tpu.memory_space<vmem>>, %arg4: memref<8x1xf32, #tpu.memory_space<vmem>>, %arg5: memref<32x128xbf16, #tpu.memory_space<vmem>>, %arg6: memref<1x128xf32, #tpu.memory_space<vmem>>, %arg7: memref<128x128xbf16, #tpu.memory_space<vmem>>, %arg8: memref<1x128xf32, #tpu.memory_space<vmem>>, %arg9: memref<8x128xf32, #tpu.memory_space<vmem>>, %arg10: memref<8x128xf32, #tpu.memory_space<vmem>>) attributes {dimension_semantics = [#tpu.dimension_semantics<parallel>, #tpu.dimension_semantics<arbitrary>], iteration_bounds = array<i64: 1, 4>, scalar_prefetch = 0 : i64, scratch_operands = 1 : i64, tpu.core_type = #tpu.core_type<tc>, window_params = [{transform_indices = @transform_0, window_bounds = array<i64: 2, 8, 32>}, {transform_indices = @transform_1, window_bounds = array<i64: 8, 1>}, {transform_indices = @transform_2, window_bounds = array<i64: 8, 1>}, {pipeline_mode = #tpu.pipeline_mode<synchronous>, transform_indices = @transform_3, window_bounds = array<i64: 32, 128>}, {pipeline_mode = #tpu.pipeline_mode<synchronous>, transform_indices = @transform_4, window_bounds = array<i64: 1, 128>}, {pipeline_mode = #tpu.pipeline_mode<synchronous>, transform_indices = @transform_5, window_bounds = array<i64: 128, 128>}, {pipeline_mode = #tpu.pipeline_mode<synchronous>, transform_indices = @transform_6, window_bounds = array<i64: 1, 128>}, {transform_indices = @transform_7, window_bounds = array<i64: 8, 128>}]} {
    %c0_i32 = arith.constant 0 : i32
    %0 = arith.cmpi eq, %arg1, %c0_i32 : i32
    %1 = arith.extui %0 : i1 to i32
    %c0_i32_0 = arith.constant 0 : i32
    %2 = arith.cmpi ne, %1, %c0_i32_0 : i32
    scf.if %2 {
      %cst_14 = arith.constant 0.000000e+00 : f32
      %20 = vector.broadcast %cst_14 : f32 to vector<8x128xf32>
      %c0_15 = arith.constant 0 : index
      %c0_16 = arith.constant 0 : index
      %21 = vector.load %arg10[%c0_15, %c0_16] : memref<8x128xf32, #tpu.memory_space<vmem>>, vector<8x128xf32>
      tpu.vector_store %arg10[%c0_15, %c0_16], %20 {strides = array<i32>} : memref<8x128xf32, #tpu.memory_space<vmem>>, vector<8x128xf32>,
    } else {
    }
    %c0 = arith.constant 0 : index
    %c0_1 = arith.constant 0 : index
    %c0_2 = arith.constant 0 : index
    %3 = vector.load %arg2[%c0, %c0_1, %c0_2] : memref<2x8x32xbf16, #tpu.memory_space<vmem>>, vector<2x8x32xbf16>
    %4 = vector.shape_cast %3 : vector<2x8x32xbf16> to vector<16x32xbf16>
    %c0_3 = arith.constant 0 : index
    %c0_4 = arith.constant 0 : index
    %5 = vector.load %arg5[%c0_3, %c0_4] : memref<32x128xbf16, #tpu.memory_space<vmem>>, vector<32x128xbf16>
    %cst = arith.constant dense<0.000000e+00> : vector<16x128xf32>
    %6 = tpu.matmul %4, %5, %cst {dimension_numbers = #tpu.dot_dimension_numbers<[1], [0], [0], [1], [0, 0, 1, 1], [], []>} : vector<16x32xbf16>, vector<32x128xbf16>, vector<16x128xf32> -> vector<16x128xf32>
    %c0_5 = arith.constant 0 : index
    %c0_6 = arith.constant 0 : index
    %7 = vector.load %arg6[%c0_5, %c0_6] : memref<1x128xf32, #tpu.memory_space<vmem>>, vector<1x128xf32>
    %8 = vector.broadcast %7 : vector<1x128xf32> to vector<16x128xf32>
    %9 = arith.addf %6, %8 : vector<16x128xf32>
    %cst_7 = arith.constant 0.000000e+00 : f32
    %10 = vector.broadcast %cst_7 : f32 to vector<16x128xf32>
    %11 = arith.maximumf %9, %10 : vector<16x128xf32>
    %c0_8 = arith.constant 0 : index
    %c0_9 = arith.constant 0 : index
    %12 = vector.load %arg10[%c0_8, %c0_9] : memref<8x128xf32, #tpu.memory_space<vmem>>, vector<8x128xf32>
    %13 = vector.shape_cast %11 : vector<16x128xf32> to vector<2x8x128xf32>
    %cst_10 = arith.constant dense<0.000000e+00> : vector<8x128xf32>
    %14 = vector.multi_reduction <add>, %13, %cst_10 [0] : vector<2x8x128xf32> to vector<8x128xf32>
    %15 = arith.addf %12, %14 : vector<8x128xf32>
    %c0_11 = arith.constant 0 : index
    %c0_12 = arith.constant 0 : index
    %16 = vector.load %arg10[%c0_11, %c0_12] : memref<8x128xf32, #tpu.memory_space<vmem>>, vector<8x128xf32>
    tpu.vector_store %arg10[%c0_11, %c0_12], %15 {strides = array<i32>} : memref<8x128xf32, #tpu.memory_space<vmem>>, vector<8x128xf32>,
    %c3_i32 = arith.constant 3 : i32
    %17 = arith.cmpi eq, %arg1, %c3_i32 : i32
    %18 = arith.extui %17 : i1 to i32
    %c0_i32_13 = arith.constant 0 : i32
    %19 = arith.cmpi ne, %18, %c0_i32_13 : i32
    scf.if %19 {
      %c0_14 = arith.constant 0 : index
      %c0_15 = arith.constant 0 : index
      %20 = vector.load %arg6[%c0_14, %c0_15] : memref<1x128xf32, #tpu.memory_space<vmem>>, vector<1x128xf32>
      %cst_16 = arith.constant 0.000000e+00 : f32
      %21 = vector.broadcast %cst_16 : f32 to vector<1x128xf32>
      %22 = arith.maximumf %20, %21 : vector<1x128xf32>
      %c0_17 = arith.constant 0 : index
      %c0_18 = arith.constant 0 : index
      %23 = vector.load %arg10[%c0_17, %c0_18] : memref<8x128xf32, #tpu.memory_space<vmem>>, vector<8x128xf32>
      %c0_19 = arith.constant 0 : index
      %c0_20 = arith.constant 0 : index
      %24 = vector.load %arg4[%c0_19, %c0_20] : memref<8x1xf32, #tpu.memory_space<vmem>>, vector<8x1xf32>
      %25 = vector.broadcast %24 : vector<8x1xf32> to vector<8x128xf32>
      %26 = vector.broadcast %22 : vector<1x128xf32> to vector<8x128xf32>
      %27 = arith.mulf %25, %26 : vector<8x128xf32>
      %28 = arith.subf %23, %27 : vector<8x128xf32>
      %c0_21 = arith.constant 0 : index
      %c0_22 = arith.constant 0 : index
      %29 = vector.load %arg3[%c0_21, %c0_22] : memref<8x1xf32, #tpu.memory_space<vmem>>, vector<8x1xf32>
      %30 = vector.broadcast %29 : vector<8x1xf32> to vector<8x128xf32>
      %31 = arith.mulf %28, %30 : vector<8x128xf32>
      %32 = arith.truncf %31 : vector<8x128xf32> to vector<8x128xbf16>
      %c0_23 = arith.constant 0 : index
      %c0_24 = arith.constant 0 : index
      %33 = vector.load %arg7[%c0_23, %c0_24] : memref<128x128xbf16, #tpu.memory_space<vmem>>, vector<128x128xbf16>
      %cst_25 = arith.constant dense<0.000000e+00> : vector<8x128xf32>
      %34 = tpu.matmul %32, %33, %cst_25 {dimension_numbers = #tpu.dot_dimension_numbers<[1], [0], [0], [1], [0, 0, 1, 1], [], []>} : vector<8x128xbf16>, vector<128x128xbf16>, vector<8x128xf32> -> vector<8x128xf32>
      %c0_26 = arith.constant 0 : index
      %c0_27 = arith.constant 0 : index
      %35 = vector.load %arg8[%c0_26, %c0_27] : memref<1x128xf32, #tpu.memory_space<vmem>>, vector<1x128xf32>
      %36 = vector.broadcast %35 : vector<1x128xf32> to vector<8x128xf32>
      %37 = arith.addf %34, %36 : vector<8x128xf32>
      %c0_28 = arith.constant 0 : index
      %c0_29 = arith.constant 0 : index
      %38 = vector.load %arg9[%c0_28, %c0_29] : memref<8x128xf32, #tpu.memory_space<vmem>>, vector<8x128xf32>
      tpu.vector_store %arg9[%c0_28, %c0_29], %37 {strides = array<i32>} : memref<8x128xf32, #tpu.memory_space<vmem>>, vector<8x128xf32>,
    } else {
    }
    return
  }
  func.func @transform_0(%arg0: i32, %arg1: i32) -> (i32, i32, i32) {
    %c0_i32 = arith.constant 0 : i32
    %c0_i32_0 = arith.constant 0 : i32
    return %arg1, %arg0, %c0_i32 : i32, i32, i32
  }
  func.func @transform_1(%arg0: i32, %arg1: i32) -> (i32, i32) {
    %c0_i32 = arith.constant 0 : i32
    %c0_i32_0 = arith.constant 0 : i32
    return %arg0, %c0_i32 : i32, i32
  }
  func.func @transform_2(%arg0: i32, %arg1: i32) -> (i32, i32) {
    %c0_i32 = arith.constant 0 : i32
    %c0_i32_0 = arith.constant 0 : i32
    return %arg0, %c0_i32 : i32, i32
  }
  func.func @transform_3(%arg0: i32, %arg1: i32) -> (i32, i32) {
    %c0_i32 = arith.constant 0 : i32
    %c0_i32_0 = arith.constant 0 : i32
    %c0_i32_1 = arith.constant 0 : i32
    return %c0_i32, %c0_i32_0 : i32, i32
  }
  func.func @transform_4(%arg0: i32, %arg1: i32) -> (i32, i32) {
    %c0_i32 = arith.constant 0 : i32
    %c0_i32_0 = arith.constant 0 : i32
    %c0_i32_1 = arith.constant 0 : i32
    return %c0_i32, %c0_i32_0 : i32, i32
  }
  func.func @transform_5(%arg0: i32, %arg1: i32) -> (i32, i32) {
    %c0_i32 = arith.constant 0 : i32
    %c0_i32_0 = arith.constant 0 : i32
    %c0_i32_1 = arith.constant 0 : i32
    return %c0_i32, %c0_i32_0 : i32, i32
  }
  func.func @transform_6(%arg0: i32, %arg1: i32) -> (i32, i32) {
    %c0_i32 = arith.constant 0 : i32
    %c0_i32_0 = arith.constant 0 : i32
    %c0_i32_1 = arith.constant 0 : i32
    return %c0_i32, %c0_i32_0 : i32, i32
  }
  func.func @transform_7(%arg0: i32, %arg1: i32) -> (i32, i32) {
    %c0_i32 = arith.constant 0 : i32
    %c0_i32_0 = arith.constant 0 : i32
    return %arg0, %c0_i32 : i32, i32
  }
}

module attributes {stable_mosaic.version = 11 : i64} {
  func.func @_ffn_mean_kernel(%arg0: i32, %arg1: i32, %arg2: memref<2x8x32xbf16, #tpu.memory_space<vmem>>, %arg3: memref<8x1xf32, #tpu.memory_space<vmem>>, %arg4: memref<8x1xf32, #tpu.memory_space<vmem>>, %arg5: memref<32x128xbf16, #tpu.memory_space<vmem>>, %arg6: memref<1x128xf32, #tpu.memory_space<vmem>>, %arg7: memref<128x128xbf16, #tpu.memory_space<vmem>>, %arg8: memref<1x128xf32, #tpu.memory_space<vmem>>, %arg9: memref<8x128xf32, #tpu.memory_space<vmem>>, %arg10: memref<8x128xf32, #tpu.memory_space<vmem>>) attributes {dimension_semantics = [#tpu.dimension_semantics<parallel>, #tpu.dimension_semantics<arbitrary>], iteration_bounds = array<i64: 1, 4>, scalar_prefetch = 0 : i64, scratch_operands = 1 : i64, tpu.core_type = #tpu.core_type<tc>, window_params = [{transform_indices = @transform_0, window_bounds = array<i64: 2, 8, 32>}, {transform_indices = @transform_1, window_bounds = array<i64: 8, 1>}, {transform_indices = @transform_2, window_bounds = array<i64: 8, 1>}, {pipeline_mode = #tpu.pipeline_mode<synchronous>, transform_indices = @transform_3, window_bounds = array<i64: 32, 128>}, {pipeline_mode = #tpu.pipeline_mode<synchronous>, transform_indices = @transform_4, window_bounds = array<i64: 1, 128>}, {pipeline_mode = #tpu.pipeline_mode<synchronous>, transform_indices = @transform_5, window_bounds = array<i64: 128, 128>}, {pipeline_mode = #tpu.pipeline_mode<synchronous>, transform_indices = @transform_6, window_bounds = array<i64: 1, 128>}, {transform_indices = @transform_7, window_bounds = array<i64: 8, 128>}]} {
    %c0_i32 = arith.constant 0 : i32
    %0 = arith.cmpi eq, %arg1, %c0_i32 : i32
    %1 = arith.extui %0 : i1 to i32
    %c0_i32_0 = arith.constant 0 : i32
    %2 = arith.cmpi ne, %1, %c0_i32_0 : i32
    scf.if %2 {
      %cst_14 = arith.constant 0.000000e+00 : f32
      %20 = vector.broadcast %cst_14 : f32 to vector<8x128xf32>
      %c0_15 = arith.constant 0 : index
      %c0_16 = arith.constant 0 : index
      %21 = vector.load %arg10[%c0_15, %c0_16] : memref<8x128xf32, #tpu.memory_space<vmem>>, vector<8x128xf32>
      tpu.vector_store %arg10[%c0_15, %c0_16], %20 {strides = array<i32>} : memref<8x128xf32, #tpu.memory_space<vmem>>, vector<8x128xf32>,
    } else {
    }
    %c0 = arith.constant 0 : index
    %c0_1 = arith.constant 0 : index
    %c0_2 = arith.constant 0 : index
    %3 = vector.load %arg2[%c0, %c0_1, %c0_2] : memref<2x8x32xbf16, #tpu.memory_space<vmem>>, vector<2x8x32xbf16>
    %4 = vector.shape_cast %3 : vector<2x8x32xbf16> to vector<16x32xbf16>
    %c0_3 = arith.constant 0 : index
    %c0_4 = arith.constant 0 : index
    %5 = vector.load %arg5[%c0_3, %c0_4] : memref<32x128xbf16, #tpu.memory_space<vmem>>, vector<32x128xbf16>
    %cst = arith.constant dense<0.000000e+00> : vector<16x128xf32>
    %6 = tpu.matmul %4, %5, %cst {dimension_numbers = #tpu.dot_dimension_numbers<[1], [0], [0], [1], [0, 0, 1, 1], [], []>} : vector<16x32xbf16>, vector<32x128xbf16>, vector<16x128xf32> -> vector<16x128xf32>
    %c0_5 = arith.constant 0 : index
    %c0_6 = arith.constant 0 : index
    %7 = vector.load %arg6[%c0_5, %c0_6] : memref<1x128xf32, #tpu.memory_space<vmem>>, vector<1x128xf32>
    %8 = vector.broadcast %7 : vector<1x128xf32> to vector<16x128xf32>
    %9 = arith.addf %6, %8 : vector<16x128xf32>
    %cst_7 = arith.constant 0.000000e+00 : f32
    %10 = vector.broadcast %cst_7 : f32 to vector<16x128xf32>
    %11 = arith.maximumf %9, %10 : vector<16x128xf32>
    %c0_8 = arith.constant 0 : index
    %c0_9 = arith.constant 0 : index
    %12 = vector.load %arg10[%c0_8, %c0_9] : memref<8x128xf32, #tpu.memory_space<vmem>>, vector<8x128xf32>
    %13 = vector.shape_cast %11 : vector<16x128xf32> to vector<2x8x128xf32>
    %cst_10 = arith.constant dense<0.000000e+00> : vector<8x128xf32>
    %14 = vector.multi_reduction <add>, %13, %cst_10 [0] : vector<2x8x128xf32> to vector<8x128xf32>
    %15 = arith.addf %12, %14 : vector<8x128xf32>
    %c0_11 = arith.constant 0 : index
    %c0_12 = arith.constant 0 : index
    %16 = vector.load %arg10[%c0_11, %c0_12] : memref<8x128xf32, #tpu.memory_space<vmem>>, vector<8x128xf32>
    tpu.vector_store %arg10[%c0_11, %c0_12], %15 {strides = array<i32>} : memref<8x128xf32, #tpu.memory_space<vmem>>, vector<8x128xf32>,
    %c3_i32 = arith.constant 3 : i32
    %17 = arith.cmpi eq, %arg1, %c3_i32 : i32
    %18 = arith.extui %17 : i1 to i32
    %c0_i32_13 = arith.constant 0 : i32
    %19 = arith.cmpi ne, %18, %c0_i32_13 : i32
    scf.if %19 {
      %c0_14 = arith.constant 0 : index
      %c0_15 = arith.constant 0 : index
      %20 = vector.load %arg6[%c0_14, %c0_15] : memref<1x128xf32, #tpu.memory_space<vmem>>, vector<1x128xf32>
      %cst_16 = arith.constant 0.000000e+00 : f32
      %21 = vector.broadcast %cst_16 : f32 to vector<1x128xf32>
      %22 = arith.maximumf %20, %21 : vector<1x128xf32>
      %c0_17 = arith.constant 0 : index
      %c0_18 = arith.constant 0 : index
      %23 = vector.load %arg10[%c0_17, %c0_18] : memref<8x128xf32, #tpu.memory_space<vmem>>, vector<8x128xf32>
      %c0_19 = arith.constant 0 : index
      %c0_20 = arith.constant 0 : index
      %24 = vector.load %arg4[%c0_19, %c0_20] : memref<8x1xf32, #tpu.memory_space<vmem>>, vector<8x1xf32>
      %25 = vector.broadcast %24 : vector<8x1xf32> to vector<8x128xf32>
      %26 = vector.broadcast %22 : vector<1x128xf32> to vector<8x128xf32>
      %27 = arith.mulf %25, %26 : vector<8x128xf32>
      %28 = arith.subf %23, %27 : vector<8x128xf32>
      %c0_21 = arith.constant 0 : index
      %c0_22 = arith.constant 0 : index
      %29 = vector.load %arg3[%c0_21, %c0_22] : memref<8x1xf32, #tpu.memory_space<vmem>>, vector<8x1xf32>
      %30 = vector.broadcast %29 : vector<8x1xf32> to vector<8x128xf32>
      %31 = arith.mulf %28, %30 : vector<8x128xf32>
      %32 = arith.truncf %31 : vector<8x128xf32> to vector<8x128xbf16>
      %c0_23 = arith.constant 0 : index
      %c0_24 = arith.constant 0 : index
      %33 = vector.load %arg7[%c0_23, %c0_24] : memref<128x128xbf16, #tpu.memory_space<vmem>>, vector<128x128xbf16>
      %cst_25 = arith.constant dense<0.000000e+00> : vector<8x128xf32>
      %34 = tpu.matmul %32, %33, %cst_25 {dimension_numbers = #tpu.dot_dimension_numbers<[1], [0], [0], [1], [0, 0, 1, 1], [], []>} : vector<8x128xbf16>, vector<128x128xbf16>, vector<8x128xf32> -> vector<8x128xf32>
      %c0_26 = arith.constant 0 : index
      %c0_27 = arith.constant 0 : index
      %35 = vector.load %arg8[%c0_26, %c0_27] : memref<1x128xf32, #tpu.memory_space<vmem>>, vector<1x128xf32>
      %36 = vector.broadcast %35 : vector<1x128xf32> to vector<8x128xf32>
      %37 = arith.addf %34, %36 : vector<8x128xf32>
      %c0_28 = arith.constant 0 : index
      %c0_29 = arith.constant 0 : index
      %38 = vector.load %arg9[%c0_28, %c0_29] : memref<8x128xf32, #tpu.memory_space<vmem>>, vector<8x128xf32>
      tpu.vector_store %arg9[%c0_28, %c0_29], %37 {strides = array<i32>} : memref<8x128xf32, #tpu.memory_space<vmem>>, vector<8x128xf32>,
    } else {
    }
    return
  }
  func.func @transform_0(%arg0: i32, %arg1: i32) -> (i32, i32, i32) {
    %c0_i32 = arith.constant 0 : i32
    %c0_i32_0 = arith.constant 0 : i32
    return %arg1, %arg0, %c0_i32 : i32, i32, i32
  }
  func.func @transform_1(%arg0: i32, %arg1: i32) -> (i32, i32) {
    %c0_i32 = arith.constant 0 : i32
    %c0_i32_0 = arith.constant 0 : i32
    return %arg0, %c0_i32 : i32, i32
  }
  func.func @transform_2(%arg0: i32, %arg1: i32) -> (i32, i32) {
    %c0_i32 = arith.constant 0 : i32
    %c0_i32_0 = arith.constant 0 : i32
    return %arg0, %c0_i32 : i32, i32
  }
  func.func @transform_3(%arg0: i32, %arg1: i32) -> (i32, i32) {
    %c0_i32 = arith.constant 0 : i32
    %c0_i32_0 = arith.constant 0 : i32
    %c0_i32_1 = arith.constant 0 : i32
    return %c0_i32, %c0_i32_0 : i32, i32
  }
  func.func @transform_4(%arg0: i32, %arg1: i32) -> (i32, i32) {
    %c0_i32 = arith.constant 0 : i32
    %c0_i32_0 = arith.constant 0 : i32
    %c0_i32_1 = arith.constant 0 : i32
    return %c0_i32, %c0_i32_0 : i32, i32
  }
  func.func @transform_5(%arg0: i32, %arg1: i32) -> (i32, i32) {
    %c0_i32 = arith.constant 0 : i32
    %c0_i32_0 = arith.constant 0 : i32
    %c0_i32_1 = arith.constant 0 : i32
    return %c0_i32, %c0_i32_0 : i32, i32
  }
  func.func @transform_6(%arg0: i32, %arg1: i32) -> (i32, i32) {
    %c0_i32 = arith.constant 0 : i32
    %c0_i32_0 = arith.constant 0 : i32
    %c0_i32_1 = arith.constant 0 : i32
    return %c0_i32, %c0_i32_0 : i32, i32
  }
  func.func @transform_7(%arg0: i32, %arg1: i32) -> (i32, i32) {
    %c0_i32 = arith.constant 0 : i32
    %c0_i32_0 = arith.constant 0 : i32
    return %arg0, %c0_i32 : i32, i32
  }
}

</mosaic_0001>

<bundles_post_ra>
// kernel: tpu_custom_call.1
= control target key start
LH: loop header
LB: loop body
LE: loop exit
PB: predicated region body
PF: predicated region fallthrough
CT: control target
= control target key end

     0   :  { %12 = vsyncpa [#allocation4], 0  ;;  %s1214_s0 = inlined_call_operand.hbm [shape: bf16[8,8,32], index: 0, kind: input, shape index: {}]   ;;  %s1215_s1 = inlined_call_operand.vmem [shape: f32[8,1], index: 1, kind: input, shape index: {}]   ;;  %s1216_s2 = inlined_call_operand.vmem [shape: f32[8,1], index: 2, kind: input, shape index: {}]   ;;  %s1217_s3 = inlined_call_operand.vmem [shape: bf16[32,128], index: 3, kind: input, shape index: {}]   ;;  %s1218_s4 = inlined_call_operand.vmem [shape: f32[1,128], index: 4, kind: input, shape index: {}]   ;;  %s1219_s5 = inlined_call_operand.hbm [shape: bf16[128,128], index: 5, kind: input, shape index: {}]   ;;  %s1220_s6 = inlined_call_operand.vmem [shape: f32[1,128], index: 6, kind: input, shape index: {}]   ;;  %s1221_s7 = inlined_call_operand.hbm [shape: f32[8,128], index: 7, kind: output, shape index: {}]  }
   0x1   :  { %14 = vsyncpa [#allocation4 + $0x1], 0 }
   0x2   :  { %15 = vsyncpa [#allocation7], 0 }
   0x3   :  { %16 = vsyncpa [#allocation5], 0  ;;  %s1050_s24 = smov 0   ;;  %s1052_s25 = smov 0  }
   0x4   :  { %s1054_s26 = smov 0   ;;  %s1056_s27 = smov 0  }
   0x5   :  { %s1058_s28 = smov 0   ;;  %s1060_s29 = smov 0  }
   0x6 LB: > { %s1222_s30 = sadd.s32 4294967295, %s997_s29   ;;  %p56_p0 = scmp.ne.s32.totalorder %s981_s25, %s977_s24  ;;  %s997_s29 = sphi %s1060_s29, %s22_s29   ;;  %s993_s28 = sphi %s1058_s28, %s1238_s28   ;;  %s989_s27 = sphi %s1056_s27, %s1237_s27   ;;  %s985_s26 = sphi %s1054_s26, %s1236_s26   ;;  %s981_s25 = sphi %s1052_s25, %s1235_s25   ;;  %s977_s24 = sphi %s1050_s24, %s1234_s24  }
   0x7   : > { %p1082_p1 = scmp.eq.s32.totalorder %s1222_s30, 0  ;;  %p696_p2 = scmp.ge.s32.totalorder %s997_s29, 1 }
   0x8   : > { %p229_p3 = scmp.lt.s32.totalorder %s997_s29, 5  ;;  %s999_s11 = smov [#allocation6]  }
   0x9   : > { %p1090_p4 = por %p1082_p1, %p56_p0  ;;  %s261_s12 = sshll.u32 %s999_s11, 4  ;;  %s262_s12 = int_to_ptr.vmem [resolvable:$true] %s261_s12 }
   0xa   : > { %p1094_p5 = pnand %p696_p2, %p229_p3  ;;  %s31_s14 = sadd.s32 1, %s993_s28 }
   0xb   : > { %s872_s15 = scalar_lea.vmem %s262_s12, 1024  ;;  %p880_p12 = scmp.lt.s32.totalorder %s262_s12, %s262_s12 }
   0xc   : > { %p778_p6 = pneg %p1094_p5  ;;  %p873_p9 = scmp.ne.s32.totalorder %s262_s12, %s872_s15 }
   0xd   : > { %p881_p13 = scmp.lt.s32.totalorder %s872_s15, %s872_s15 }
   0xe   : > { %p1102_p7 = pnand %p778_p6, %p1082_p1 }
   0xf   : > { %p882_p0 = por %p881_p13, %p880_p12 }
  0x10   : > { %p863_p8 = pneg %p1102_p7 }
  0x12   : > { %p875_p10 = pnand %p873_p9, %p863_p8 }
  0x14   : > { %p876_p11 = pneg %p875_p10 }
  0x16   : > { %p883_p2 = pnand %p882_p0, %p876_p11 }
  0x18   : > { %886 = shalt.err (!%p883_p2)
}
  0x19   : > { %s1223_s16 = smov 64   ;;  %s1224_s17 = smov 4  }
  0x1a   : > { %781 = dma.hbm_to_vmem [thread:$0]  (!%p1102_p7), %s1219_s5, 1024, %s262_s12, [#allocation7], %s1223_s16, %s1223_s16, %s1224_s17  }
  0x1b   : > { %p32_p3 = scmp.ge.s32.totalorder %s31_s14, 4  ;;  %s43_s20 = sadd.s32 1, %s985_s26 }
  0x1c   : > { %p50_p6 = scmp.ne.s32.totalorder %s985_s26, %s981_s25  ;;  %p51_p8 = scmp.eq.s32.totalorder %s997_s29, 0 }
  0x1d   : > { %s1240_s14 = smov (%p32_p3, %s31_s14), 0  ;;  %p787_p10 = scmp.lt.s32.totalorder %s997_s29, 4 }
  0x1e   : > { %p52_p9 = por %p51_p8, %p50_p6  ;;  %s38_s21 = ssub.s32 %s993_s28, %s1240_s14 }
  0x1f   : > { %s278_s22 = sand.u32 1, %s985_s26   ;;  %p41_p11 = scmp.eq.s32.totalorder %s38_s21, 0 }
  0x20   : > { %s701_s23 = sshll.u32 %s278_s22, 3  ;;  %s727_s24 = sshll.u32 %s993_s28, 7 }
  0x21   : > { %s1129_s11 = scalar_select %p41_p11, %s985_s26, %s43_s20  }
  0x22   : > { %s289_s12 = scalar_lea.hbm %s1214_s0, %s727_s24  ;;  %s282_s18 = scalar_lea.vmem [#allocation3], %s701_s23 }
  0x23   : > { %s290_s19 = sshll.u32 %s282_s18, 4  ;;  %p1134_p7 = pnand %p787_p10, %p52_p9  ;;  %s291_s19 = int_to_ptr.vmem [resolvable:$true] %s290_s19 }
  0x24   : > { %s279_s16 = scalar_lea.sflag [#allocation4], %s278_s22  ;;  %s900_s21 = scalar_lea.vmem %s291_s19, 128 }
  0x25   : > { %p889_p12 = pneg %p1134_p7  ;;  %p901_p13 = scmp.ne.s32.totalorder %s291_s19, %s900_s21 }
  0x26   : > { %s1002_s20 = smov [#allocation3]  }
  0x27   : > { %p903_p0 = pnand %p901_p13, %p889_p12  ;;  %s905_s17 = sshll.u32 %s1002_s20, 4  ;;  %s906_s17 = int_to_ptr.vmem [resolvable:$false] %s905_s17 }
  0x28   : > { %s907_s13 = scalar_lea.vmem %s906_s17, 256  ;;  %p908_p3 = scmp.lt.s32.totalorder %s291_s19, %s906_s17 }
  0x29   : > { %p904_p2 = pneg %p903_p0  ;;  %p909_p6 = scmp.lt.s32.totalorder %s907_s13, %s900_s21 }
  0x2b   : > { %p910_p8 = por %p909_p6, %p908_p3 }
  0x2d   : > { %p911_p9 = pnand %p910_p8, %p904_p2 }
  0x2f   : > { %914 = shalt.err (!%p911_p9)
}
  0x30   : > { %s1230_s23 = smov 4   ;;  %s1231_s24 = smov 64  }
  0x31   : > { %785 = dma.hbm_to_vmem [thread:$0]  (!%p1134_p7), %s289_s12, 128, %s291_s19, %s279_s16, %s1231_s24, %s1231_s24, %s1230_s23  }
  0x32   : > { %302 = sbr.rel (%p1094_p5) target bundleno = 630 (0x276), region = 48  ;;  %s304_s22 = sand.u32 (!%p1094_p5), 1, %s981_s25  }
  0x33   : > { %s705_s15 = sshll.u32 (!%p1094_p5), %s304_s22, 3  ;;  %s305_s18 = scalar_lea.sflag (!%p1094_p5), [#allocation4], %s304_s22 }
  0x34   : > { %s308_s20 = scalar_lea.vmem (!%p1094_p5), [#allocation3], %s705_s15 }
  0x37   : > { %964 = dma.done.wait (%p1090_p4), %s305_s18, 128  }
  0x38   : > { %966 = vsyncadd (%p1090_p4), %s305_s18, 4294967168 }
  0x39   : > { %968 = dma.done.wait (%p1082_p1), [#allocation7], 1024  }
  0x3a   : > { %970 = vsyncadd (%p1082_p1), [#allocation7], 4294966272  ;;  %p707_p10 = scmp.ne.s32.totalorder %s989_s27, 0 }
  0x3c   : > { %359 = sbr.rel (%p707_p10) target bundleno = 67 (0x43), region = 60 }
  0x41   : > { %v1003_v0 = vmov 0.0  }
  0x42   : > { %360 = vst [vmem:[#allocation2] sm:$0xff] %v1003_v0 }
  0x43 PF: > { %v849_v1 = vld [vmem:[%s1217_s3 + $0x8] sm:$0xff]   ;;  %v1004_v2 = vmov 0.0   ;;  %v850_v3 = vld [vmem:[%s1217_s3] sm:$0xff]   ;;  %vm1005_vm0 = vmmov 0   ;;  %vm391_vm1 = vcmask 261120   ;;  %p713_p1 = scmp.ne.s32.totalorder %s989_s27, 3 }
  0x44   : > { %740 = vmatprep.subr.bf16.mxu0 %v1004_v2  ;;  %744 = vmatprep.mubr.msk.bf16.mxu0 %vm1005_vm0, %v1004_v2  ;;  %v851_v4 = vld [vmem:[%s308_s20] sm:$0xff]   ;;  %v708_v5 = vld [vmem:[%s1218_s4] ss:$0 sm:$0xff] }
  0x45   : > { %741 = vmatpush3.bf16.msra.mxu0 %v849_v1 }
  0x46   : > { %742 = vmatprep.subr.bf16.mxu0 %v1004_v2 }
  0x49   : > { %743 = vmatpush3.bf16.msra.mxu0 %v850_v3  ;;  %v438_v14 = vld [vmem:[#allocation2] sm:$0xff] }
  0x4c   : > { %745 = vmatmul.mubr.msk.bf16.vlgmr.msra.gmra.mxu0 %vm391_vm1, %v851_v4 }
 0x10c   : > { %v429_v6 = vpop.f32.mrf.mxu0 }
 0x10d   : > { %v430_v8 = vadd.f32 %v708_v5, %v429_v6 }
 0x10e   : > { %v746_v7 = vpop.f32.mrf.mxu0 }
 0x10f   : > { %v436_v12 = vmax.f32 %v430_v8, 0.0 }
 0x110   : > { %v432_v9 = vpop.f32.mrf.mxu0 }
 0x111   : > { %v433_v10 = vadd.f32 %v708_v5, %v432_v9 }
 0x112   : > { %v747_v11 = vpop.f32.mrf.mxu0 }
 0x113   : > { %v437_v13 = vmax.f32 %v433_v10, 0.0 }
 0x115   : > { %v439_v15 = vadd.f32 %v437_v13, %v436_v12  ;;  %445 = sbr.rel (%p713_p1) target bundleno = 615 (0x267), region = 64 }
 0x117   : > { %v440_v16 = vadd.f32 %v439_v15, %v438_v14 }
 0x119   : > { %441 = vst [vmem:[#allocation2] sm:$0xff] %v440_v16 }
 0x11a   : > { %v449_v17 = vld [vmem:[%s1216_s2] sm:$0xff]  ;;  %v1006_v18 = vmov 0   ;;  %v1007_v19 = vmov 0.0   ;;  %v853_v20 = vld [vmem:[#allocation6 + $0x38] sm:$0xff]   ;;  %v854_v22 = vld [vmem:[#allocation6 + $0x30] sm:$0xff]   ;;  %vm1008_vm2 = vmmov 0   ;;  %v456_v29 = vlaneseq }
 0x11b   : > { %852 = vset.pattern.permute.xlu0 %v1006_v18  ;;  %748 = vmatprep.subr.bf16.mxu0 %v1007_v19  ;;  %v463_v21 = vld [vmem:[%s1215_s1] sm:$0xff]  ;;  %v856_v24 = vld [vmem:[#allocation6 + $0x20] sm:$0xff]   ;;  %v857_v25 = vld [vmem:[#allocation6 + $0x18] sm:$0xff]  }
 0x11c   : > { %452 = vperm.xlu0 %852, %v449_v17   ;;  %749 = vmatpush3.bf16.msra.mxu0 %v853_v20  ;;  %v855_v23 = vld [vmem:[#allocation6 + $0x28] sm:$0xff]   ;;  %v858_v26 = vld [vmem:[#allocation6 + $0x10] sm:$0xff]   ;;  %v860_v28 = vld [vmem:[#allocation6] sm:$0xff]   ;;  %v457_v30 = vshrl.u32 %v456_v29, 7 }
 0x11d   : > { %750 = vmatprep.subr.bf16.mxu0 %v1007_v19  ;;  %764 = vmatprep.mubr.msk.bf16.mxu0 %vm1008_vm2, %v1007_v19  ;;  %v859_v27 = vld [vmem:[#allocation6 + $0x8] sm:$0xff]  }
 0x11e   : > { %v446_v31 = vld [vmem:[%s1218_s4] sm:$0x1]  ;;  %v458_v32 = vsub.s32 0, %v457_v30 }
 0x11f   : > { %v447_v33 = vmax.f32 %v446_v31, 0.0  ;;  %v714_v42 = vld [vmem:[%s1220_s6] ss:$0 sm:$0xff] }
 0x120   : > { %466 = vperm.xlu0 %852, %v463_v21   ;;  %751 = vmatpush3.bf16.msra.mxu0 %v854_v22  ;;  %v448_v36 = vld [vmem:[#allocation2] sm:$0xff] }
 0x121   : > { %752 = vmatprep.subr.bf16.mxu0 %v1007_v19  ;;  %v459_v34 = vrot.slane %v447_v33, %v458_v32 }
 0x124   : > { %753 = vmatpush3.bf16.msra.mxu0 %v855_v23 }
 0x125   : > { %754 = vmatprep.subr.bf16.mxu0 %v1007_v19 }
 0x128   : > { %755 = vmatpush3.bf16.msra.mxu0 %v856_v24 }
 0x129   : > { %756 = vmatprep.subr.bf16.mxu0 %v1007_v19 }
 0x12c   : > { %757 = vmatpush3.bf16.msra.mxu0 %v857_v25 }
 0x12d   : > { %758 = vmatprep.subr.bf16.mxu0 %v1007_v19 }
 0x130   : > { %759 = vmatpush3.bf16.msra.mxu0 %v858_v26 }
 0x131   : > { %760 = vmatprep.subr.bf16.mxu0 %v1007_v19 }
 0x134   : > { %761 = vmatpush3.bf16.msra.mxu0 %v859_v27 }
 0x135   : > { %762 = vmatprep.subr.bf16.mxu0 %v1007_v19 }
 0x138   : > { %763 = vmatpush3.bf16.msra.mxu0 %v860_v28 }
 0x197   : > { %v453_v35 = vpop.permute.xlu0 %452 }
 0x198   : > { %v461_v37 = vmul.f32 %v459_v34, %v453_v35 }
 0x19a   : > { %v462_v38 = vsub.f32 %v448_v36, %v461_v37 }
 0x19b   : > { %v467_v39 = vpop.permute.xlu0 %466 }
 0x19c   : > { %v469_v40 = vmul.f32 %v467_v39, %v462_v38 }
 0x19e   : > { %v470_v41 = vpack.c.bf16 %v469_v40, %v469_v40 }
 0x1a0   : > { %765 = vmatmul.mubr.bf16.vlgmr.msra.gmra.mxu0 %v470_v41 }
 0x260   : > { %v576_v43 = vpop.f32.mrf.mxu0 }
 0x261   : > { %v577_v44 = vadd.f32 %v714_v42, %v576_v43 }
 0x262   : > { %v766_v45 = vpop.f32.mrf.mxu0 }
 0x263   : > { %582 = vst [vmem:[#allocation8] sm:$0xff] %v577_v44 }
 0x264   : > { %v579_v46 = vpop.f32.mrf.mxu0 }
 0x266   : > { %v767_v47 = vpop.f32.mrf.mxu0 }
 0x267 PF: > { %s1232_s15 = sadd.s32 4294967295, %s997_s29   ;;  %s1009_s20 = smov [#allocation8]  }
 0x268   : > { %p1181_p4 = scmp.eq.s32.totalorder %s1232_s15, 3  ;;  %s592_s30 = sshll.u32 %s1009_s20, 4  ;;  %s593_s30 = int_to_ptr.vmem [resolvable:$true] %s592_s30 }
 0x269   : > { %s915_s10 = scalar_lea.vmem %s593_s30, 128  ;;  %p922_p12 = scmp.lt.s32.totalorder %s593_s30, %s593_s30 }
 0x26a   : > { %p916_p5 = scmp.ne.s32.totalorder %s593_s30, %s915_s10  ;;  %p923_p13 = scmp.lt.s32.totalorder %s915_s10, %s915_s10 }
 0x26c   : > { %p917_p11 = pnand %p916_p5, %p1181_p4  ;;  %p924_p0 = por %p923_p13, %p922_p12 }
 0x26e   : > { %p918_p7 = pneg %p917_p11 }
 0x270   : > { %p925_p2 = pnand %p924_p0, %p918_p7 }
 0x272   : > { %928 = shalt.err (!%p925_p2)
}
 0x273   : > { %775 = dma.vmem_to_hbm [thread:$0]  (%p1181_p4), %s593_s30, 128, %s1221_s7, [#allocation5]  }
 0x274   : > { %972 = dma.done.wait (%p1181_p4), [#allocation5], 128  }
 0x275   : > { %974 = vsyncadd (%p1181_p4), [#allocation5], 4294967168 }
 0x276 PF: > { %s22_s29 = sadd.s32 1, %s997_s29   ;;  %s1234_s24 = smov %s981_s25 }
 0x277   : > { %p19_p3 = scmp.ge.s32.totalorder %s22_s29, 6   ;;  %s1235_s25 = smov %s985_s26 }
 0x278   : > { %s1236_s26 = smov %s1129_s11  ;;  %s1237_s27 = smov %s993_s28 }
 0x279   : > { %s1238_s28 = smov %s1240_s14  ;;  %21 = sbr.rel (!%p19_p3) target bundleno = 6 (0x6), region = 104 }
 0x27e   :  { %605 = vsyncpa [#allocation4], 1 }
 0x27f   :  { %607 = vsyncpa [#allocation4 + $0x1], 1 }
 0x280   :  { %608 = vsyncpa [#allocation7], 1 }
 0x281   :  { %609 = vsyncpa [#allocation5], 1 }
 0x282   :  { %611 = vsyncpa [#allocation5 + $0x1], 1 }

// kernel: tpu_custom_call.1
= control target key start
LH: loop header
LB: loop body
LE: loop exit
PB: predicated region body
PF: predicated region fallthrough
CT: control target
= control target key end

     0   :  { %12 = vsyncpa [#allocation4], 0  ;;  %s1214_s0 = inlined_call_operand.hbm [shape: bf16[8,8,32], index: 0, kind: input, shape index: {}]   ;;  %s1215_s1 = inlined_call_operand.vmem [shape: f32[8,1], index: 1, kind: input, shape index: {}]   ;;  %s1216_s2 = inlined_call_operand.vmem [shape: f32[8,1], index: 2, kind: input, shape index: {}]   ;;  %s1217_s3 = inlined_call_operand.vmem [shape: bf16[32,128], index: 3, kind: input, shape index: {}]   ;;  %s1218_s4 = inlined_call_operand.vmem [shape: f32[1,128], index: 4, kind: input, shape index: {}]   ;;  %s1219_s5 = inlined_call_operand.hbm [shape: bf16[128,128], index: 5, kind: input, shape index: {}]   ;;  %s1220_s6 = inlined_call_operand.vmem [shape: f32[1,128], index: 6, kind: input, shape index: {}]   ;;  %s1221_s7 = inlined_call_operand.hbm [shape: f32[8,128], index: 7, kind: output, shape index: {}]  }
   0x1   :  { %14 = vsyncpa [#allocation4 + $0x1], 0 }
   0x2   :  { %15 = vsyncpa [#allocation7], 0 }
   0x3   :  { %16 = vsyncpa [#allocation5], 0  ;;  %s1050_s24 = smov 0   ;;  %s1052_s25 = smov 0  }
   0x4   :  { %s1054_s26 = smov 0   ;;  %s1056_s27 = smov 0  }
   0x5   :  { %s1058_s28 = smov 0   ;;  %s1060_s29 = smov 0  }
   0x6 LB: > { %s1222_s30 = sadd.s32 4294967295, %s997_s29   ;;  %p56_p0 = scmp.ne.s32.totalorder %s981_s25, %s977_s24  ;;  %s997_s29 = sphi %s1060_s29, %s22_s29   ;;  %s993_s28 = sphi %s1058_s28, %s1238_s28   ;;  %s989_s27 = sphi %s1056_s27, %s1237_s27   ;;  %s985_s26 = sphi %s1054_s26, %s1236_s26   ;;  %s981_s25 = sphi %s1052_s25, %s1235_s25   ;;  %s977_s24 = sphi %s1050_s24, %s1234_s24  }
   0x7   : > { %p1082_p1 = scmp.eq.s32.totalorder %s1222_s30, 0  ;;  %p696_p2 = scmp.ge.s32.totalorder %s997_s29, 1 }
   0x8   : > { %p229_p3 = scmp.lt.s32.totalorder %s997_s29, 5  ;;  %s999_s11 = smov [#allocation6]  }
   0x9   : > { %p1090_p4 = por %p1082_p1, %p56_p0  ;;  %s261_s12 = sshll.u32 %s999_s11, 4  ;;  %s262_s12 = int_to_ptr.vmem [resolvable:$true] %s261_s12 }
   0xa   : > { %p1094_p5 = pnand %p696_p2, %p229_p3  ;;  %s31_s14 = sadd.s32 1, %s993_s28 }
   0xb   : > { %s872_s15 = scalar_lea.vmem %s262_s12, 1024  ;;  %p880_p12 = scmp.lt.s32.totalorder %s262_s12, %s262_s12 }
   0xc   : > { %p778_p6 = pneg %p1094_p5  ;;  %p873_p9 = scmp.ne.s32.totalorder %s262_s12, %s872_s15 }
   0xd   : > { %p881_p13 = scmp.lt.s32.totalorder %s872_s15, %s872_s15 }
   0xe   : > { %p1102_p7 = pnand %p778_p6, %p1082_p1 }
   0xf   : > { %p882_p0 = por %p881_p13, %p880_p12 }
  0x10   : > { %p863_p8 = pneg %p1102_p7 }
  0x12   : > { %p875_p10 = pnand %p873_p9, %p863_p8 }
  0x14   : > { %p876_p11 = pneg %p875_p10 }
  0x16   : > { %p883_p2 = pnand %p882_p0, %p876_p11 }
  0x18   : > { %886 = shalt.err (!%p883_p2)
}
  0x19   : > { %s1223_s16 = smov 64   ;;  %s1224_s17 = smov 4  }
  0x1a   : > { %781 = dma.hbm_to_vmem [thread:$0]  (!%p1102_p7), %s1219_s5, 1024, %s262_s12, [#allocation7], %s1223_s16, %s1223_s16, %s1224_s17  }
  0x1b   : > { %p32_p3 = scmp.ge.s32.totalorder %s31_s14, 4  ;;  %s43_s20 = sadd.s32 1, %s985_s26 }
  0x1c   : > { %p50_p6 = scmp.ne.s32.totalorder %s985_s26, %s981_s25  ;;  %p51_p8 = scmp.eq.s32.totalorder %s997_s29, 0 }
  0x1d   : > { %s1240_s14 = smov (%p32_p3, %s31_s14), 0  ;;  %p787_p10 = scmp.lt.s32.totalorder %s997_s29, 4 }
  0x1e   : > { %p52_p9 = por %p51_p8, %p50_p6  ;;  %s38_s21 = ssub.s32 %s993_s28, %s1240_s14 }
  0x1f   : > { %s278_s22 = sand.u32 1, %s985_s26   ;;  %p41_p11 = scmp.eq.s32.totalorder %s38_s21, 0 }
  0x20   : > { %s701_s23 = sshll.u32 %s278_s22, 3  ;;  %s727_s24 = sshll.u32 %s993_s28, 7 }
  0x21   : > { %s1129_s11 = scalar_select %p41_p11, %s985_s26, %s43_s20  }
  0x22   : > { %s289_s12 = scalar_lea.hbm %s1214_s0, %s727_s24  ;;  %s282_s18 = scalar_lea.vmem [#allocation3], %s701_s23 }
  0x23   : > { %s290_s19 = sshll.u32 %s282_s18, 4  ;;  %p1134_p7 = pnand %p787_p10, %p52_p9  ;;  %s291_s19 = int_to_ptr.vmem [resolvable:$true] %s290_s19 }
  0x24   : > { %s279_s16 = scalar_lea.sflag [#allocation4], %s278_s22  ;;  %s900_s21 = scalar_lea.vmem %s291_s19, 128 }
  0x25   : > { %p889_p12 = pneg %p1134_p7  ;;  %p901_p13 = scmp.ne.s32.totalorder %s291_s19, %s900_s21 }
  0x26   : > { %s1002_s20 = smov [#allocation3]  }
  0x27   : > { %p903_p0 = pnand %p901_p13, %p889_p12  ;;  %s905_s17 = sshll.u32 %s1002_s20, 4  ;;  %s906_s17 = int_to_ptr.vmem [resolvable:$false] %s905_s17 }
  0x28   : > { %s907_s13 = scalar_lea.vmem %s906_s17, 256  ;;  %p908_p3 = scmp.lt.s32.totalorder %s291_s19, %s906_s17 }
  0x29   : > { %p904_p2 = pneg %p903_p0  ;;  %p909_p6 = scmp.lt.s32.totalorder %s907_s13, %s900_s21 }
  0x2b   : > { %p910_p8 = por %p909_p6, %p908_p3 }
  0x2d   : > { %p911_p9 = pnand %p910_p8, %p904_p2 }
  0x2f   : > { %914 = shalt.err (!%p911_p9)
}
  0x30   : > { %s1230_s23 = smov 4   ;;  %s1231_s24 = smov 64  }
  0x31   : > { %785 = dma.hbm_to_vmem [thread:$0]  (!%p1134_p7), %s289_s12, 128, %s291_s19, %s279_s16, %s1231_s24, %s1231_s24, %s1230_s23  }
  0x32   : > { %302 = sbr.rel (%p1094_p5) target bundleno = 630 (0x276), region = 48  ;;  %s304_s22 = sand.u32 (!%p1094_p5), 1, %s981_s25  }
  0x33   : > { %s705_s15 = sshll.u32 (!%p1094_p5), %s304_s22, 3  ;;  %s305_s18 = scalar_lea.sflag (!%p1094_p5), [#allocation4], %s304_s22 }
  0x34   : > { %s308_s20 = scalar_lea.vmem (!%p1094_p5), [#allocation3], %s705_s15 }
  0x37   : > { %964 = dma.done.wait (%p1090_p4), %s305_s18, 128  }
  0x38   : > { %966 = vsyncadd (%p1090_p4), %s305_s18, 4294967168 }
  0x39   : > { %968 = dma.done.wait (%p1082_p1), [#allocation7], 1024  }
  0x3a   : > { %970 = vsyncadd (%p1082_p1), [#allocation7], 4294966272  ;;  %p707_p10 = scmp.ne.s32.totalorder %s989_s27, 0 }
  0x3c   : > { %359 = sbr.rel (%p707_p10) target bundleno = 67 (0x43), region = 60 }
  0x41   : > { %v1003_v0 = vmov 0.0  }
  0x42   : > { %360 = vst [vmem:[#allocation2] sm:$0xff] %v1003_v0 }
  0x43 PF: > { %v849_v1 = vld [vmem:[%s1217_s3 + $0x8] sm:$0xff]   ;;  %v1004_v2 = vmov 0.0   ;;  %v850_v3 = vld [vmem:[%s1217_s3] sm:$0xff]   ;;  %vm1005_vm0 = vmmov 0   ;;  %vm391_vm1 = vcmask 261120   ;;  %p713_p1 = scmp.ne.s32.totalorder %s989_s27, 3 }
  0x44   : > { %740 = vmatprep.subr.bf16.mxu0 %v1004_v2  ;;  %744 = vmatprep.mubr.msk.bf16.mxu0 %vm1005_vm0, %v1004_v2  ;;  %v851_v4 = vld [vmem:[%s308_s20] sm:$0xff]   ;;  %v708_v5 = vld [vmem:[%s1218_s4] ss:$0 sm:$0xff] }
  0x45   : > { %741 = vmatpush3.bf16.msra.mxu0 %v849_v1 }
  0x46   : > { %742 = vmatprep.subr.bf16.mxu0 %v1004_v2 }
  0x49   : > { %743 = vmatpush3.bf16.msra.mxu0 %v850_v3  ;;  %v438_v14 = vld [vmem:[#allocation2] sm:$0xff] }
  0x4c   : > { %745 = vmatmul.mubr.msk.bf16.vlgmr.msra.gmra.mxu0 %vm391_vm1, %v851_v4 }
 0x10c   : > { %v429_v6 = vpop.f32.mrf.mxu0 }
 0x10d   : > { %v430_v8 = vadd.f32 %v708_v5, %v429_v6 }
 0x10e   : > { %v746_v7 = vpop.f32.mrf.mxu0 }
 0x10f   : > { %v436_v12 = vmax.f32 %v430_v8, 0.0 }
 0x110   : > { %v432_v9 = vpop.f32.mrf.mxu0 }
 0x111   : > { %v433_v10 = vadd.f32 %v708_v5, %v432_v9 }
 0x112   : > { %v747_v11 = vpop.f32.mrf.mxu0 }
 0x113   : > { %v437_v13 = vmax.f32 %v433_v10, 0.0 }
 0x115   : > { %v439_v15 = vadd.f32 %v437_v13, %v436_v12  ;;  %445 = sbr.rel (%p713_p1) target bundleno = 615 (0x267), region = 64 }
 0x117   : > { %v440_v16 = vadd.f32 %v439_v15, %v438_v14 }
 0x119   : > { %441 = vst [vmem:[#allocation2] sm:$0xff] %v440_v16 }
 0x11a   : > { %v449_v17 = vld [vmem:[%s1216_s2] sm:$0xff]  ;;  %v1006_v18 = vmov 0   ;;  %v1007_v19 = vmov 0.0   ;;  %v853_v20 = vld [vmem:[#allocation6 + $0x38] sm:$0xff]   ;;  %v854_v22 = vld [vmem:[#allocation6 + $0x30] sm:$0xff]   ;;  %vm1008_vm2 = vmmov 0   ;;  %v456_v29 = vlaneseq }
 0x11b   : > { %852 = vset.pattern.permute.xlu0 %v1006_v18  ;;  %748 = vmatprep.subr.bf16.mxu0 %v1007_v19  ;;  %v463_v21 = vld [vmem:[%s1215_s1] sm:$0xff]  ;;  %v856_v24 = vld [vmem:[#allocation6 + $0x20] sm:$0xff]   ;;  %v857_v25 = vld [vmem:[#allocation6 + $0x18] sm:$0xff]  }
 0x11c   : > { %452 = vperm.xlu0 %852, %v449_v17   ;;  %749 = vmatpush3.bf16.msra.mxu0 %v853_v20  ;;  %v855_v23 = vld [vmem:[#allocation6 + $0x28] sm:$0xff]   ;;  %v858_v26 = vld [vmem:[#allocation6 + $0x10] sm:$0xff]   ;;  %v860_v28 = vld [vmem:[#allocation6] sm:$0xff]   ;;  %v457_v30 = vshrl.u32 %v456_v29, 7 }
 0x11d   : > { %750 = vmatprep.subr.bf16.mxu0 %v1007_v19  ;;  %764 = vmatprep.mubr.msk.bf16.mxu0 %vm1008_vm2, %v1007_v19  ;;  %v859_v27 = vld [vmem:[#allocation6 + $0x8] sm:$0xff]  }
 0x11e   : > { %v446_v31 = vld [vmem:[%s1218_s4] sm:$0x1]  ;;  %v458_v32 = vsub.s32 0, %v457_v30 }
 0x11f   : > { %v447_v33 = vmax.f32 %v446_v31, 0.0  ;;  %v714_v42 = vld [vmem:[%s1220_s6] ss:$0 sm:$0xff] }
 0x120   : > { %466 = vperm.xlu0 %852, %v463_v21   ;;  %751 = vmatpush3.bf16.msra.mxu0 %v854_v22  ;;  %v448_v36 = vld [vmem:[#allocation2] sm:$0xff] }
 0x121   : > { %752 = vmatprep.subr.bf16.mxu0 %v1007_v19  ;;  %v459_v34 = vrot.slane %v447_v33, %v458_v32 }
 0x124   : > { %753 = vmatpush3.bf16.msra.mxu0 %v855_v23 }
 0x125   : > { %754 = vmatprep.subr.bf16.mxu0 %v1007_v19 }
 0x128   : > { %755 = vmatpush3.bf16.msra.mxu0 %v856_v24 }
 0x129   : > { %756 = vmatprep.subr.bf16.mxu0 %v1007_v19 }
 0x12c   : > { %757 = vmatpush3.bf16.msra.mxu0 %v857_v25 }
 0x12d   : > { %758 = vmatprep.subr.bf16.mxu0 %v1007_v19 }
 0x130   : > { %759 = vmatpush3.bf16.msra.mxu0 %v858_v26 }
 0x131   : > { %760 = vmatprep.subr.bf16.mxu0 %v1007_v19 }
 0x134   : > { %761 = vmatpush3.bf16.msra.mxu0 %v859_v27 }
 0x135   : > { %762 = vmatprep.subr.bf16.mxu0 %v1007_v19 }
 0x138   : > { %763 = vmatpush3.bf16.msra.mxu0 %v860_v28 }
 0x197   : > { %v453_v35 = vpop.permute.xlu0 %452 }
 0x198   : > { %v461_v37 = vmul.f32 %v459_v34, %v453_v35 }
 0x19a   : > { %v462_v38 = vsub.f32 %v448_v36, %v461_v37 }
 0x19b   : > { %v467_v39 = vpop.permute.xlu0 %466 }
 0x19c   : > { %v469_v40 = vmul.f32 %v467_v39, %v462_v38 }
 0x19e   : > { %v470_v41 = vpack.c.bf16 %v469_v40, %v469_v40 }
 0x1a0   : > { %765 = vmatmul.mubr.bf16.vlgmr.msra.gmra.mxu0 %v470_v41 }
 0x260   : > { %v576_v43 = vpop.f32.mrf.mxu0 }
 0x261   : > { %v577_v44 = vadd.f32 %v714_v42, %v576_v43 }
 0x262   : > { %v766_v45 = vpop.f32.mrf.mxu0 }
 0x263   : > { %582 = vst [vmem:[#allocation8] sm:$0xff] %v577_v44 }
 0x264   : > { %v579_v46 = vpop.f32.mrf.mxu0 }
 0x266   : > { %v767_v47 = vpop.f32.mrf.mxu0 }
 0x267 PF: > { %s1232_s15 = sadd.s32 4294967295, %s997_s29   ;;  %s1009_s20 = smov [#allocation8]  }
 0x268   : > { %p1181_p4 = scmp.eq.s32.totalorder %s1232_s15, 3  ;;  %s592_s30 = sshll.u32 %s1009_s20, 4  ;;  %s593_s30 = int_to_ptr.vmem [resolvable:$true] %s592_s30 }
 0x269   : > { %s915_s10 = scalar_lea.vmem %s593_s30, 128  ;;  %p922_p12 = scmp.lt.s32.totalorder %s593_s30, %s593_s30 }
 0x26a   : > { %p916_p5 = scmp.ne.s32.totalorder %s593_s30, %s915_s10  ;;  %p923_p13 = scmp.lt.s32.totalorder %s915_s10, %s915_s10 }
 0x26c   : > { %p917_p11 = pnand %p916_p5, %p1181_p4  ;;  %p924_p0 = por %p923_p13, %p922_p12 }
 0x26e   : > { %p918_p7 = pneg %p917_p11 }
 0x270   : > { %p925_p2 = pnand %p924_p0, %p918_p7 }
 0x272   : > { %928 = shalt.err (!%p925_p2)
}
 0x273   : > { %775 = dma.vmem_to_hbm [thread:$0]  (%p1181_p4), %s593_s30, 128, %s1221_s7, [#allocation5]  }
 0x274   : > { %972 = dma.done.wait (%p1181_p4), [#allocation5], 128  }
 0x275   : > { %974 = vsyncadd (%p1181_p4), [#allocation5], 4294967168 }
 0x276 PF: > { %s22_s29 = sadd.s32 1, %s997_s29   ;;  %s1234_s24 = smov %s981_s25 }
 0x277   : > { %p19_p3 = scmp.ge.s32.totalorder %s22_s29, 6   ;;  %s1235_s25 = smov %s985_s26 }
 0x278   : > { %s1236_s26 = smov %s1129_s11  ;;  %s1237_s27 = smov %s993_s28 }
 0x279   : > { %s1238_s28 = smov %s1240_s14  ;;  %21 = sbr.rel (!%p19_p3) target bundleno = 6 (0x6), region = 104 }
 0x27e   :  { %605 = vsyncpa [#allocation4], 1 }
 0x27f   :  { %607 = vsyncpa [#allocation4 + $0x1], 1 }
 0x280   :  { %608 = vsyncpa [#allocation7], 1 }
 0x281   :  { %609 = vsyncpa [#allocation5], 1 }
 0x282   :  { %611 = vsyncpa [#allocation5 + $0x1], 1 }

</bundles_post_ra>
